<compile_context>
chip_gen: v7x
topology: tpu7x:2x2x1
jax: 0.10.0
libtpu: 0.0.40
codegen_flags: <defaults>
</compile_context>

<pallas_src>
import numpy as np
import jax
import jax.numpy as jnp
from jax.experimental import pallas as pl
from jax.experimental.pallas import tpu as pltpu

LANE = 128                  # TPU lane width: padded hidden feature width
N_ACTIONS = 3               # fc3 output width in the original module
OUT_PAD = 8                 # narrow HBM-facing output width (>= N_ACTIONS)
MAX_BATCH_TILE = 256        # 256-row tile: multi-step grid, bounded padding waste
NEG_BIG = -1e30             # finite "-inf" folded into padded fc3 bias lanes
STATE_LANE_PAD_MIN = 32     # lane-pad the state dim only once it's nontrivial


def _round_up(x, m):
    return ((x + m - 1) // m) * m


def actor_kernel(x_ref, w1_ref, b1_ref, w2_ref, b2_ref, w3_ref, b3_ref, out_ref):
    x = x_ref[...]

    # fc1 + ReLU   (TB, S) @ (S, 128)
    h1 = jnp.dot(x, w1_ref[...], preferred_element_type=jnp.float32) + b1_ref[...]
    h1 = jnp.maximum(h1, 0.0)

    # fc2 + ReLU   (TB, 128) @ (128, 128)
    h2 = jnp.dot(h1, w2_ref[...], preferred_element_type=jnp.float32) + b2_ref[...]
    h2 = jnp.maximum(h2, 0.0)

    # fc3          (TB, 128) @ (128, 128).  Padded w3 columns are zero and
    # padded b3 lanes are -1e30, so padded logits underflow to exactly 0 after
    # exp -- the mask lives in the bias, no per-tile iota/where needed.
    logits = jnp.dot(h2, w3_ref[...], preferred_element_type=jnp.float32) + b3_ref[...]

    m = jnp.max(logits, axis=-1, keepdims=True)
    e = jnp.exp(logits - m)
    s = jnp.sum(e, axis=-1, keepdims=True)
    inv = pl.reciprocal(s, approx=True)        # EUP vrcp in an otherwise-idle slot
    inv = inv * (2.0 - s * inv)                # one Newton step on (TB,1) -> f32 accuracy

    # Narrow HBM-facing store: only the first OUT_PAD lanes carry real actions
    # (lanes >= N_ACTIONS are exactly 0 and are sliced off in the wrapper).
    out_ref[...] = e[:, :OUT_PAD] * inv


def _pad_params_for_tpu(params, state_pad):
    """Zero-pad weights so hidden/output dims are 128-lane aligned; fold the
    softmax action mask into the padded fc3 bias lanes (-1e30)."""
    w1, b1, w2, b2, w3, b3 = params

    w1p = jnp.pad(w1, ((0, state_pad - w1.shape[0]), (0, LANE - w1.shape[1])))
    w2p = jnp.pad(w2, ((0, LANE - w2.shape[0]), (0, LANE - w2.shape[1])))
    w3p = jnp.pad(w3, ((0, LANE - w3.shape[0]), (0, LANE - w3.shape[1])))
    b1p = jnp.pad(b1, ((0, 0), (0, LANE - b1.shape[1])))
    b2p = jnp.pad(b2, ((0, 0), (0, LANE - b2.shape[1])))
    b3p = jnp.pad(b3, ((0, 0), (0, LANE - b3.shape[1])), constant_values=NEG_BIG)
    return (w1p, b1p, w2p, b2p, w3p, b3p)


def actor_forward(x, params):
    """x: (B, nb_states) f32 -> (B, 3) f32 softmax action distribution."""
    B, nb_states = x.shape
    hidden1 = params[0].shape[1]
    hidden2 = params[2].shape[1]

    # Lane-pad the contraction (state) dim only when it's big enough to matter.
    if nb_states >= STATE_LANE_PAD_MIN and nb_states % LANE != 0:
        state_pad = _round_up(nb_states, LANE)
    else:
        state_pad = nb_states

    w1, b1, w2, b2, w3, b3 = _pad_params_for_tpu(params, state_pad)
    if state_pad != nb_states:
        x = jnp.pad(x, ((0, 0), (0, state_pad - nb_states)))

    # Batch tile: multiple of 8 sublanes, capped at 256 rows so the grid has
    # multiple steps (megacore sharding, pipeline depth) and padding waste is
    # bounded, while the whole working set stays tiny in VMEM on every chip.
    tb = min(MAX_BATCH_TILE, _round_up(B, 8))
    b_pad = _round_up(B, tb)
    if b_pad != B:
        x = jnp.pad(x, ((0, b_pad - B), (0, 0)))
    grid = (b_pad // tb,)

    flops = 2 * b_pad * (nb_states * hidden1 + hidden1 * hidden2 + hidden2 * N_ACTIONS)
    bytes_accessed = (
        x.size * 4 + b_pad * OUT_PAD * 4
        + sum(int(np.prod(p.shape)) * 4 for p in (w1, b1, w2, b2, w3, b3))
    )
    cost = pl.CostEstimate(
        flops=flops,
        transcendentals=b_pad * (N_ACTIONS + 1),   # exp + reciprocal
        bytes_accessed=bytes_accessed,
    )

    out_padded = pl.pallas_call(
        actor_kernel,
        out_shape=jax.ShapeDtypeStruct((b_pad, OUT_PAD), jnp.float32),
        grid=grid,
        in_specs=[
            pl.BlockSpec((tb, state_pad), lambda i: (i, 0)),       # x: tiled on batch
            pl.BlockSpec((state_pad, LANE), lambda i: (0, 0)),     # w1: resident
            pl.BlockSpec((1, LANE), lambda i: (0, 0)),             # b1: resident
            pl.BlockSpec((LANE, LANE), lambda i: (0, 0)),          # w2: resident
            pl.BlockSpec((1, LANE), lambda i: (0, 0)),             # b2: resident
            pl.BlockSpec((LANE, LANE), lambda i: (0, 0)),          # w3: resident
            pl.BlockSpec((1, LANE), lambda i: (0, 0)),             # b3 (+mask): resident
        ],
        out_specs=pl.BlockSpec((tb, OUT_PAD), lambda i: (i, 0)),
        compiler_params=pltpu.CompilerParams(
            dimension_semantics=("parallel",),
            vmem_limit_bytes=32 * 1024 * 1024,
        ),
        cost_estimate=cost,
    )(x, w1, b1, w2, b2, w3, b3)

    return out_padded[:B, :N_ACTIONS]


def init_actor_params(key, nb_states, hidden1=40, hidden2=30, init_w=0.003):
    """Deterministic init mirroring the PyTorch module's fanin_init scheme.

    PyTorch Linear weight is (out, in); fanin_init uses size[0] == out_features
    as the fan-in bound (as written in the reference code).  Weights here are
    stored as (in, out) for x @ W.
    """
    k1, k2, k3, kb1, kb2, kb3 = jax.random.split(key, 6)

    v1 = 1.0 / np.sqrt(hidden1)   # fanin_init(fc1.weight.size()) -> size[0] = hidden1
    v2 = 1.0 / np.sqrt(hidden2)   # size[0] = hidden2

    w1 = jax.random.uniform(k1, (nb_states, hidden1), jnp.float32, -v1, v1)
    w2 = jax.random.uniform(k2, (hidden1, hidden2), jnp.float32, -v2, v2)
    w3 = jax.random.uniform(k3, (hidden2, N_ACTIONS), jnp.float32, -init_w, init_w)

    # nn.Linear default bias init: U(-1/sqrt(fan_in), 1/sqrt(fan_in)); the
    # module does not re-init biases, so reproduce that here.  Kept 2-D for TPU.
    bb1 = 1.0 / np.sqrt(nb_states)
    bb2 = 1.0 / np.sqrt(hidden1)
    bb3 = 1.0 / np.sqrt(hidden2)
    b1 = jax.random.uniform(kb1, (1, hidden1), jnp.float32, -bb1, bb1)
    b2 = jax.random.uniform(kb2, (1, hidden2), jnp.float32, -bb2, bb2)
    b3 = jax.random.uniform(kb3, (1, N_ACTIONS), jnp.float32, -bb3, bb3)

    return (w1, b1, w2, b2, w3, b3)


def actor_reference(x, params):
    """Pure-JAX reference for correctness checking (unpadded params)."""
    w1, b1, w2, b2, w3, b3 = params
    h1 = jnp.maximum(x @ w1 + b1, 0.0)
    h2 = jnp.maximum(h1 @ w2 + b2, 0.0)
    logits = h2 @ w3 + b3
    return jax.nn.softmax(logits, axis=-1)


if __name__ == "__main__":
    key = jax.random.PRNGKey(0)
    k_param, k_x = jax.random.split(key)

    batch = 2
    nb_states = 8

    params = init_actor_params(k_param, nb_states, hidden1=40, hidden2=30)
    x = jax.random.normal(k_x, (batch, nb_states), dtype=jnp.float32)

    out = actor_forward(x, params)
    out = jax.block_until_ready(out)

    ref = actor_reference(x, params)
    np.testing.assert_allclose(np.asarray(out), np.asarray(ref), rtol=1e-5, atol=1e-5)
    assert out.shape == (batch, N_ACTIONS)
    # softmax rows sum to 1
    np.testing.assert_allclose(np.asarray(out).sum(axis=-1), np.ones(batch), rtol=1e-5)

    print("KERNEL_OK")
</pallas_src>

<mosaic_0001>
module attributes {stable_mosaic.version = 11 : i64} {
  func.func @actor_kernel(%arg0: i32, %arg1: memref<8x8xf32, #tpu.memory_space<vmem>>, %arg2: memref<8x128xf32, #tpu.memory_space<vmem>>, %arg3: memref<1x128xf32, #tpu.memory_space<vmem>>, %arg4: memref<128x128xf32, #tpu.memory_space<vmem>>, %arg5: memref<1x128xf32, #tpu.memory_space<vmem>>, %arg6: memref<128x128xf32, #tpu.memory_space<vmem>>, %arg7: memref<1x128xf32, #tpu.memory_space<vmem>>, %arg8: memref<8x8xf32, #tpu.memory_space<vmem>>) attributes {dimension_semantics = [#tpu.dimension_semantics<parallel>], iteration_bounds = array<i64: 1>, scalar_prefetch = 0 : i64, scratch_operands = 0 : i64, tpu.core_type = #tpu.core_type<tc>, window_params = [{transform_indices = @transform_0, window_bounds = array<i64: 8, 8>}, {pipeline_mode = #tpu.pipeline_mode<synchronous>, transform_indices = @transform_1, window_bounds = array<i64: 8, 128>}, {pipeline_mode = #tpu.pipeline_mode<synchronous>, transform_indices = @transform_2, window_bounds = array<i64: 1, 128>}, {pipeline_mode = #tpu.pipeline_mode<synchronous>, transform_indices = @transform_3, window_bounds = array<i64: 128, 128>}, {pipeline_mode = #tpu.pipeline_mode<synchronous>, transform_indices = @transform_4, window_bounds = array<i64: 1, 128>}, {pipeline_mode = #tpu.pipeline_mode<synchronous>, transform_indices = @transform_5, window_bounds = array<i64: 128, 128>}, {pipeline_mode = #tpu.pipeline_mode<synchronous>, transform_indices = @transform_6, window_bounds = array<i64: 1, 128>}, {transform_indices = @transform_7, window_bounds = array<i64: 8, 8>}]} {
    %c0 = arith.constant 0 : index
    %c0_0 = arith.constant 0 : index
    %0 = vector.load %arg1[%c0, %c0_0] : memref<8x8xf32, #tpu.memory_space<vmem>>, vector<8x8xf32>
    %c0_1 = arith.constant 0 : index
    %c0_2 = arith.constant 0 : index
    %1 = vector.load %arg2[%c0_1, %c0_2] : memref<8x128xf32, #tpu.memory_space<vmem>>, vector<8x128xf32>
    %cst = arith.constant dense<0.000000e+00> : vector<8x128xf32>
    %2 = tpu.matmul %0, %1, %cst {dimension_numbers = #tpu.dot_dimension_numbers<[1], [0], [0], [1], [0, 0, 1, 1], [], []>} : vector<8x8xf32>, vector<8x128xf32>, vector<8x128xf32> -> vector<8x128xf32>
    %c0_3 = arith.constant 0 : index
    %c0_4 = arith.constant 0 : index
    %3 = vector.load %arg3[%c0_3, %c0_4] : memref<1x128xf32, #tpu.memory_space<vmem>>, vector<1x128xf32>
    %4 = vector.broadcast %3 : vector<1x128xf32> to vector<8x128xf32>
    %5 = arith.addf %2, %4 : vector<8x128xf32>
    %cst_5 = arith.constant 0.000000e+00 : f32
    %6 = vector.broadcast %cst_5 : f32 to vector<8x128xf32>
    %7 = arith.maximumf %5, %6 : vector<8x128xf32>
    %c0_6 = arith.constant 0 : index
    %c0_7 = arith.constant 0 : index
    %8 = vector.load %arg4[%c0_6, %c0_7] : memref<128x128xf32, #tpu.memory_space<vmem>>, vector<128x128xf32>
    %cst_8 = arith.constant dense<0.000000e+00> : vector<8x128xf32>
    %9 = tpu.matmul %7, %8, %cst_8 {dimension_numbers = #tpu.dot_dimension_numbers<[1], [0], [0], [1], [0, 0, 1, 1], [], []>} : vector<8x128xf32>, vector<128x128xf32>, vector<8x128xf32> -> vector<8x128xf32>
    %c0_9 = arith.constant 0 : index
    %c0_10 = arith.constant 0 : index
    %10 = vector.load %arg5[%c0_9, %c0_10] : memref<1x128xf32, #tpu.memory_space<vmem>>, vector<1x128xf32>
    %11 = vector.broadcast %10 : vector<1x128xf32> to vector<8x128xf32>
    %12 = arith.addf %9, %11 : vector<8x128xf32>
    %cst_11 = arith.constant 0.000000e+00 : f32
    %13 = vector.broadcast %cst_11 : f32 to vector<8x128xf32>
    %14 = arith.maximumf %12, %13 : vector<8x128xf32>
    %c0_12 = arith.constant 0 : index
    %c0_13 = arith.constant 0 : index
    %15 = vector.load %arg6[%c0_12, %c0_13] : memref<128x128xf32, #tpu.memory_space<vmem>>, vector<128x128xf32>
    %cst_14 = arith.constant dense<0.000000e+00> : vector<8x128xf32>
    %16 = tpu.matmul %14, %15, %cst_14 {dimension_numbers = #tpu.dot_dimension_numbers<[1], [0], [0], [1], [0, 0, 1, 1], [], []>} : vector<8x128xf32>, vector<128x128xf32>, vector<8x128xf32> -> vector<8x128xf32>
    %c0_15 = arith.constant 0 : index
    %c0_16 = arith.constant 0 : index
    %17 = vector.load %arg7[%c0_15, %c0_16] : memref<1x128xf32, #tpu.memory_space<vmem>>, vector<1x128xf32>
    %18 = vector.broadcast %17 : vector<1x128xf32> to vector<8x128xf32>
    %19 = arith.addf %16, %18 : vector<8x128xf32>
    %cst_17 = arith.constant dense<0xFF800000> : vector<8xf32>
    %20 = vector.multi_reduction <maximumf>, %19, %cst_17 [1] : vector<8x128xf32> to vector<8xf32>
    %21 = vector.shape_cast %20 : vector<8xf32> to vector<8x1xf32>
    %22 = vector.broadcast %21 : vector<8x1xf32> to vector<8x128xf32>
    %23 = arith.subf %19, %22 : vector<8x128xf32>
    %24 = math.exp %23 : vector<8x128xf32>
    %cst_18 = arith.constant dense<0.000000e+00> : vector<8xf32>
    %25 = vector.multi_reduction <add>, %24, %cst_18 [1] : vector<8x128xf32> to vector<8xf32>
    %26 = vector.shape_cast %25 : vector<8xf32> to vector<8x1xf32>
    %27 = tpu.reciprocal %26 {approx = true} : vector<8x1xf32> -> vector<8x1xf32>
    %28 = arith.mulf %26, %27 : vector<8x1xf32>
    %cst_19 = arith.constant 2.000000e+00 : f32
    %29 = vector.broadcast %cst_19 : f32 to vector<8x1xf32>
    %30 = arith.subf %29, %28 : vector<8x1xf32>
    %31 = arith.mulf %27, %30 : vector<8x1xf32>
    %32 = vector.extract_strided_slice %24 {offsets = [0, 0], sizes = [8, 8], strides = [1, 1]} : vector<8x128xf32> to vector<8x8xf32>
    %33 = vector.broadcast %31 : vector<8x1xf32> to vector<8x8xf32>
    %34 = arith.mulf %32, %33 : vector<8x8xf32>
    %c0_20 = arith.constant 0 : index
    %c0_21 = arith.constant 0 : index
    %35 = vector.load %arg8[%c0_20, %c0_21] : memref<8x8xf32, #tpu.memory_space<vmem>>, vector<8x8xf32>
    tpu.vector_store %arg8[%c0_20, %c0_21], %34 {strides = array<i32>} : memref<8x8xf32, #tpu.memory_space<vmem>>, vector<8x8xf32>,
    return
  }
  func.func @transform_0(%arg0: i32) -> (i32, i32) {
    %c0_i32 = arith.constant 0 : i32
    %c0_i32_0 = arith.constant 0 : i32
    return %arg0, %c0_i32 : i32, i32
  }
  func.func @transform_1(%arg0: i32) -> (i32, i32) {
    %c0_i32 = arith.constant 0 : i32
    %c0_i32_0 = arith.constant 0 : i32
    %c0_i32_1 = arith.constant 0 : i32
    return %c0_i32, %c0_i32_0 : i32, i32
  }
  func.func @transform_2(%arg0: i32) -> (i32, i32) {
    %c0_i32 = arith.constant 0 : i32
    %c0_i32_0 = arith.constant 0 : i32
    %c0_i32_1 = arith.constant 0 : i32
    return %c0_i32, %c0_i32_0 : i32, i32
  }
  func.func @transform_3(%arg0: i32) -> (i32, i32) {
    %c0_i32 = arith.constant 0 : i32
    %c0_i32_0 = arith.constant 0 : i32
    %c0_i32_1 = arith.constant 0 : i32
    return %c0_i32, %c0_i32_0 : i32, i32
  }
  func.func @transform_4(%arg0: i32) -> (i32, i32) {
    %c0_i32 = arith.constant 0 : i32
    %c0_i32_0 = arith.constant 0 : i32
    %c0_i32_1 = arith.constant 0 : i32
    return %c0_i32, %c0_i32_0 : i32, i32
  }
  func.func @transform_5(%arg0: i32) -> (i32, i32) {
    %c0_i32 = arith.constant 0 : i32
    %c0_i32_0 = arith.constant 0 : i32
    %c0_i32_1 = arith.constant 0 : i32
    return %c0_i32, %c0_i32_0 : i32, i32
  }
  func.func @transform_6(%arg0: i32) -> (i32, i32) {
    %c0_i32 = arith.constant 0 : i32
    %c0_i32_0 = arith.constant 0 : i32
    %c0_i32_1 = arith.constant 0 : i32
    return %c0_i32, %c0_i32_0 : i32, i32
  }
  func.func @transform_7(%arg0: i32) -> (i32, i32) {
    %c0_i32 = arith.constant 0 : i32
    %c0_i32_0 = arith.constant 0 : i32
    return %arg0, %c0_i32 : i32, i32
  }
}

</mosaic_0001>

<bundles_post_ra>
// kernel: tpu_custom_call.1
= control target key start
LH: loop header
LB: loop body
LE: loop exit
PB: predicated region body
PF: predicated region fallthrough
CT: control target
= control target key end

     0   :  { %12 = vsyncpa [#allocation3], 0  ;;  %s814_s0 = inlined_call_operand.hbm [shape: f32[8,8], index: 0, kind: input, shape index: {}]   ;;  %s815_s1 = inlined_call_operand.hbm [shape: f32[8,128], index: 1, kind: input, shape index: {}]   ;;  %s816_s2 = inlined_call_operand.vmem [shape: f32[1,128], index: 2, kind: input, shape index: {}]   ;;  %s817_s3 = inlined_call_operand.hbm [shape: f32[128,128], index: 3, kind: input, shape index: {}]   ;;  %s818_s4 = inlined_call_operand.vmem [shape: f32[1,128], index: 4, kind: input, shape index: {}]   ;;  %s819_s5 = inlined_call_operand.hbm [shape: f32[128,128], index: 5, kind: input, shape index: {}]   ;;  %s820_s6 = inlined_call_operand.vmem [shape: f32[1,128], index: 6, kind: input, shape index: {}]   ;;  %s821_s7 = inlined_call_operand.hbm [shape: f32[8,8], index: 7, kind: output, shape index: {}]  }
   0x1   :  { %13 = vsyncpa [#allocation6], 0 }
   0x2   :  { %14 = vsyncpa [#allocation9], 0 }
   0x3   :  { %15 = vsyncpa [#allocation4], 0  ;;  %s674_s24 = smov [#allocation5]   ;;  %s675_s26 = smov [#allocation2]  }
   0x4   :  { %s32_s25 = sshll.u32 %s674_s24, 4  ;;  %s22_s27 = sshll.u32 %s675_s26, 4  ;;  %s33_s25 = int_to_ptr.vmem [resolvable:$true] %s32_s25  ;;  %s23_s27 = int_to_ptr.vmem [resolvable:$true] %s22_s27 }
   0x5   :  { %s556_s30 = scalar_lea.hbm %s815_s1, 128 }
   0x6   :  { %p557_p0 = scmp.ne.s32.totalorder %s815_s1, %s556_s30  ;;  %p560_p1 = scmp.lt.u32.totalorder %s556_s30, %s815_s1 }
   0x8   :  { %p562_p2 = pnand %p560_p1, %p557_p0 }
   0xa   :  { %565 = shalt.err (!%p562_p2)
}
   0xb   :  { %s566_s12 = scalar_lea.vmem %s33_s25, 128  ;;  %p571_p4 = scmp.lt.s32.totalorder %s33_s25, %s33_s25 }
   0xc   :  { %p567_p3 = scmp.ne.s32.totalorder %s33_s25, %s566_s12  ;;  %p572_p5 = scmp.lt.s32.totalorder %s566_s12, %s566_s12 }
   0xe   :  { %p573_p6 = por %p572_p5, %p571_p4 }
  0x10   :  { %p574_p7 = pnand %p573_p6, %p567_p3 }
  0x12   :  { %577 = shalt.err (!%p574_p7)
}
  0x13   :  { %35 = dma.hbm_to_vmem [thread:$0]  %s815_s1, 128, %s33_s25, [#allocation6]  }
  0x14   :  { %s578_s17 = scalar_lea.hbm %s814_s0, 128 }
  0x15   :  { %p579_p8 = scmp.ne.s32.totalorder %s814_s0, %s578_s17  ;;  %p582_p9 = scmp.lt.u32.totalorder %s578_s17, %s814_s0 }
  0x17   :  { %p584_p10 = pnand %p582_p9, %p579_p8 }
  0x19   :  { %587 = shalt.err (!%p584_p10)
}
  0x1a   :  { %s588_s22 = scalar_lea.vmem %s23_s27, 128  ;;  %p593_p12 = scmp.lt.s32.totalorder %s23_s27, %s23_s27 }
  0x1b   :  { %p589_p11 = scmp.ne.s32.totalorder %s23_s27, %s588_s22  ;;  %p594_p13 = scmp.lt.s32.totalorder %s588_s22, %s588_s22 }
  0x1d   :  { %p595_p0 = por %p594_p13, %p593_p12 }
  0x1f   :  { %p596_p1 = pnand %p595_p0, %p589_p11 }
  0x21   :  { %599 = shalt.err (!%p596_p1)
}
  0x22   :  { %25 = dma.hbm_to_vmem [thread:$0]  %s814_s0, 128, %s23_s27, [#allocation3]  }
  0x23   :  { %s676_s24 = smov [#allocation7]   ;;  %s600_s29 = scalar_lea.hbm %s817_s3, 2048 }
  0x24   :  { %s43_s25 = sshll.u32 %s676_s24, 4  ;;  %p601_p2 = scmp.ne.s32.totalorder %s817_s3, %s600_s29  ;;  %s44_s25 = int_to_ptr.vmem [resolvable:$true] %s43_s25 }
  0x25   :  { %p604_p3 = scmp.lt.u32.totalorder %s600_s29, %s817_s3 }
  0x27   :  { %p606_p4 = pnand %p604_p3, %p601_p2 }
  0x29   :  { %609 = shalt.err (!%p606_p4)
}
  0x2a   :  { %s610_s11 = scalar_lea.vmem %s44_s25, 2048  ;;  %p615_p6 = scmp.lt.s32.totalorder %s44_s25, %s44_s25 }
  0x2b   :  { %p611_p5 = scmp.ne.s32.totalorder %s44_s25, %s610_s11  ;;  %p616_p7 = scmp.lt.s32.totalorder %s610_s11, %s610_s11 }
  0x2d   :  { %p617_p8 = por %p616_p7, %p615_p6 }
  0x2f   :  { %p618_p9 = pnand %p617_p8, %p611_p5 }
  0x31   :  { %621 = shalt.err (!%p618_p9)
}
  0x32   :  { %s677_s0 = smov 128   ;;  %s678_s27 = smov 8  }
  0x33   :  { %49 = dma.hbm_to_vmem [thread:$0]  %s817_s3, 2048, %s44_s25, [#allocation6], %s677_s0, %s677_s0, %s678_s27  }
  0x34   :  { %s679_s14 = smov [#allocation8]   ;;  %s622_s18 = scalar_lea.hbm %s819_s5, 2048 }
  0x35   :  { %s57_s15 = sshll.u32 %s679_s14, 4  ;;  %p623_p10 = scmp.ne.s32.totalorder %s819_s5, %s622_s18  ;;  %s58_s15 = int_to_ptr.vmem [resolvable:$true] %s57_s15 }
  0x36   :  { %p626_p11 = scmp.lt.u32.totalorder %s622_s18, %s819_s5 }
  0x38   :  { %p628_p12 = pnand %p626_p11, %p623_p10 }
  0x3a   :  { %631 = shalt.err (!%p628_p12)
}
  0x3b   :  { %s632_s1 = scalar_lea.vmem %s58_s15, 2048  ;;  %p637_p0 = scmp.lt.s32.totalorder %s58_s15, %s58_s15 }
  0x3c   :  { %p633_p13 = scmp.ne.s32.totalorder %s58_s15, %s632_s1  ;;  %p638_p1 = scmp.lt.s32.totalorder %s632_s1, %s632_s1 }
  0x3e   :  { %p639_p2 = por %p638_p1, %p637_p0 }
  0x40   :  { %p640_p3 = pnand %p639_p2, %p633_p13 }
  0x42   :  { %643 = shalt.err (!%p640_p3)
}
  0x43   :  { %63 = dma.hbm_to_vmem [thread:$0]  %s819_s5, 2048, %s58_s15, [#allocation9], %s677_s0, %s677_s0, %s678_s27  }
  0x44   :  { %666 = dma.done.wait [#allocation3], 128  }
  0x45   :  { %667 = vsyncadd [#allocation3], 4294967168 }
  0x46   :  { %668 = dma.done.wait [#allocation6], 2176  }
  0x47   :  { %669 = vsyncadd [#allocation6], 4294965120 }
  0x48   :  { %670 = dma.done.wait [#allocation9], 2048  }
  0x49   :  { %671 = vsyncadd [#allocation9], 4294965248  ;;  %v680_v0 = vmov 0.0   ;;  %vm681_vm0 = vmmov 0   ;;  %v682_v1 = vmov 0.0|0.0   ;;  %vm87_vm1 = vcmask 64512  }
  0x4a   :  { %419 = vmatprep.subr.mxu0 %v680_v0  ;;  %421 = vmatprep.mubr.msk.f32.mxu0 %vm681_vm0, %v680_v0  ;;  %v79_v2 = vld [vmem:[#allocation5] sm:$0xff]  ;;  %v78_v3 = vld [vmem:[#allocation2] sm:$0xff]  ;;  %v162_v4 = vld [vmem:[#allocation7] sm:$0xff] }
  0x4b   :  { %494 = vmatprep.subr.bf16.mxu1 %v682_v1  ;;  %456 = vmatprep.mubr.msk.f32.mxu1 %vm681_vm0, %v680_v0  ;;  %v163_v5 = vld [vmem:[#allocation7 + $0x8] sm:$0xff]  ;;  %v164_v6 = vld [vmem:[#allocation7 + $0x10] sm:$0xff]  ;;  %v165_v7 = vld [vmem:[#allocation7 + $0x18] sm:$0xff] }
  0x4c   :  { %420 = vmatpush3.msra.mxu0 %v79_v2  ;;  %v495_v8 = vpack.c.bf16 %v163_v5, %v162_v4  ;;  %v498_v9 = vpack.c.bf16 %v165_v7, %v164_v6  ;;  %v166_v10 = vld [vmem:[#allocation7 + $0x20] sm:$0xff]  ;;  %v167_v11 = vld [vmem:[#allocation7 + $0x28] sm:$0xff]  ;;  %v168_v13 = vld [vmem:[#allocation7 + $0x30] sm:$0xff] }
  0x4d   :  { %422 = vmatmul.mubr.msk.f32.vlgmr.msra.gmra.mrb[0].mxu0 %vm87_vm1, %v78_v3  ;;  %518 = vmatprep.subr.bf16.mxu0 %v682_v1  ;;  %v501_v12 = vpack.c.bf16 %v167_v11, %v166_v10  ;;  %v169_v14 = vld [vmem:[#allocation7 + $0x38] sm:$0xff]  ;;  %v170_v16 = vld [vmem:[#allocation7 + $0x40] sm:$0xff]  ;;  %v171_v17 = vld [vmem:[#allocation7 + $0x48] sm:$0xff] }
  0x4e   :  { %491 = vmatprep.mubr.msk.f32.mxu0 %vm681_vm0, %v680_v0  ;;  %496 = vmatpush3.bf16.msra.mxu1 %v495_v8  ;;  %v504_v15 = vpack.c.bf16 %v169_v14, %v168_v13  ;;  %v507_v18 = vpack.c.bf16 %v171_v17, %v170_v16  ;;  %v172_v19 = vld [vmem:[#allocation7 + $0x50] sm:$0xff]  ;;  %v173_v20 = vld [vmem:[#allocation7 + $0x58] sm:$0xff]  ;;  %v174_v22 = vld [vmem:[#allocation7 + $0x60] sm:$0xff] }
  0x4f   :  { %497 = vmatprep.subr.bf16.mxu1 %v682_v1  ;;  %v510_v21 = vpack.c.bf16 %v173_v20, %v172_v19  ;;  %v175_v23 = vld [vmem:[#allocation7 + $0x68] sm:$0xff]  ;;  %v176_v25 = vld [vmem:[#allocation7 + $0x70] sm:$0xff]  ;;  %v177_v26 = vld [vmem:[#allocation7 + $0x78] sm:$0xff] }
  0x50   :  { %v513_v24 = vpack.c.bf16 %v175_v23, %v174_v22  ;;  %v516_v27 = vpack.c.bf16 %v177_v26, %v176_v25  ;;  %v256_v28 = vld [vmem:[#allocation8] sm:$0xff]  ;;  %v257_v29 = vld [vmem:[#allocation8 + $0x8] sm:$0xff]  ;;  %v258_v30 = vld [vmem:[#allocation8 + $0x10] sm:$0xff] }
  0x51   :  { %v519_v31 = vpack.c.bf16 %v257_v29, %v256_v28  ;;  %v259_v32 = vld [vmem:[#allocation8 + $0x18] sm:$0xff]  ;;  %v260_v34 = vld [vmem:[#allocation8 + $0x20] sm:$0xff]  ;;  %v261_v35 = vld [vmem:[#allocation8 + $0x28] sm:$0xff] }
  0x52   :  { %499 = vmatpush3.bf16.msra.mxu1 %v498_v9  ;;  %v522_v33 = vpack.c.bf16 %v259_v32, %v258_v30  ;;  %v525_v36 = vpack.c.bf16 %v261_v35, %v260_v34  ;;  %v262_v37 = vld [vmem:[#allocation8 + $0x30] sm:$0xff]  ;;  %v263_v38 = vld [vmem:[#allocation8 + $0x38] sm:$0xff]  ;;  %v264_v40 = vld [vmem:[#allocation8 + $0x40] sm:$0xff] }
  0x53   :  { %500 = vmatprep.subr.bf16.mxu1 %v682_v1  ;;  %520 = vmatpush3.bf16.msra.mxu0 %v519_v31  ;;  %v528_v39 = vpack.c.bf16 %v263_v38, %v262_v37  ;;  %v265_v41 = vld [vmem:[#allocation8 + $0x48] sm:$0xff]  ;;  %v266_v43 = vld [vmem:[#allocation8 + $0x50] sm:$0xff]  ;;  %v267_v44 = vld [vmem:[#allocation8 + $0x58] sm:$0xff] }
  0x54   :  { %521 = vmatprep.subr.bf16.mxu0 %v682_v1  ;;  %v531_v42 = vpack.c.bf16 %v265_v41, %v264_v40  ;;  %v534_v45 = vpack.c.bf16 %v267_v44, %v266_v43  ;;  %v268_v46 = vld [vmem:[#allocation8 + $0x60] sm:$0xff]  ;;  %v269_v47 = vld [vmem:[#allocation8 + $0x68] sm:$0xff]  ;;  %v379_v49 = vld [vmem:[%s816_s2] ss:$0 sm:$0xff] }
  0x55   :  { %v537_v48 = vpack.c.bf16 %v269_v47, %v268_v46  ;;  %v270_v54 = vld [vmem:[#allocation8 + $0x70] sm:$0xff]  ;;  %v271_v55 = vld [vmem:[#allocation8 + $0x78] sm:$0xff] }
  0x56   :  { %502 = vmatpush3.bf16.msra.mxu1 %v501_v12  ;;  %v540_v56 = vpack.c.bf16 %v271_v55, %v270_v54  ;;  %v381_v57 = vld [vmem:[%s818_s4] ss:$0 sm:$0xff]  ;;  %s683_s4 = smov [#allocation10]  }
  0x57   :  { %503 = vmatprep.subr.bf16.mxu1 %v682_v1  ;;  %523 = vmatpush3.bf16.msra.mxu0 %v522_v33  ;;  %v382_v62 = vld [vmem:[%s820_s6] ss:$0 sm:$0xff]  ;;  %s368_s29 = sshll.u32 %s683_s4, 4  ;;  %s369_s29 = int_to_ptr.vmem [resolvable:$true] %s368_s29 }
  0x58   :  { %524 = vmatprep.subr.bf16.mxu0 %v682_v1  ;;  %s644_s6 = scalar_lea.vmem %s369_s29, 128  ;;  %p649_p5 = scmp.lt.s32.totalorder %s369_s29, %s369_s29 }
  0x59   :  { %p645_p4 = scmp.ne.s32.totalorder %s369_s29, %s644_s6  ;;  %p650_p6 = scmp.lt.s32.totalorder %s644_s6, %s644_s6 }
  0x5a   :  { %505 = vmatpush3.bf16.msra.mxu1 %v504_v15 }
  0x5b   :  { %506 = vmatprep.subr.bf16.mxu1 %v682_v1  ;;  %526 = vmatpush3.bf16.msra.mxu0 %v525_v36  ;;  %p651_p7 = por %p650_p6, %p649_p5 }
  0x5c   :  { %527 = vmatprep.subr.bf16.mxu0 %v682_v1 }
  0x5d   :  { %p652_p8 = pnand %p651_p7, %p645_p4 }
  0x5e   :  { %508 = vmatpush3.bf16.msra.mxu1 %v507_v18 }
  0x5f   :  { %509 = vmatprep.subr.bf16.mxu1 %v682_v1  ;;  %529 = vmatpush3.bf16.msra.mxu0 %v528_v39 }
  0x60   :  { %530 = vmatprep.subr.bf16.mxu0 %v682_v1 }
  0x62   :  { %511 = vmatpush3.bf16.msra.mxu1 %v510_v21 }
  0x63   :  { %512 = vmatprep.subr.bf16.mxu1 %v682_v1  ;;  %532 = vmatpush3.bf16.msra.mxu0 %v531_v42 }
  0x64   :  { %533 = vmatprep.subr.bf16.mxu0 %v682_v1 }
  0x66   :  { %514 = vmatpush3.bf16.msra.mxu1 %v513_v24 }
  0x67   :  { %515 = vmatprep.subr.bf16.mxu1 %v682_v1  ;;  %535 = vmatpush3.bf16.msra.mxu0 %v534_v45 }
  0x68   :  { %536 = vmatprep.subr.bf16.mxu0 %v682_v1 }
  0x6a   :  { %517 = vmatpush3.bf16.msra.mxu1 %v516_v27 }
  0x6b   :  { %538 = vmatpush3.bf16.msra.mxu0 %v537_v48 }
  0x6c   :  { %539 = vmatprep.subr.bf16.mxu0 %v682_v1 }
  0x6f   :  { %541 = vmatpush3.bf16.msra.mxu0 %v540_v56 }
 0x120   :  { %v157_v50 = vpop.f32.mrb[0].mxu0 }
 0x121   :  { %v158_v51 = vadd.f32 %v379_v49, %v157_v50  ;;  %v423_v52 = vpop.f32.mrb[1].mxu0 }
 0x123   :  { %v161_v53 = vmax.f32 %v158_v51, 0.0 }
 0x125   :  { %457 = vmatmul.mubr.f32.vlgmr.msra.gmra.mrb[0].mxu1 %v161_v53 }
 0x1f8   :  { %v251_v58 = vpop.f32.mrb[0].mxu1 }
 0x1f9   :  { %v252_v59 = vadd.f32 %v381_v57, %v251_v58  ;;  %v458_v60 = vpop.f32.mrb[1].mxu1 }
 0x1fb   :  { %v255_v61 = vmax.f32 %v252_v59, 0.0 }
 0x1fd   :  { %492 = vmatmul.mubr.f32.vlgmr.msra.gmra.mrb[2].mxu0 %v255_v61 }
 0x2d0   :  { %v345_v63 = vpop.f32.mrb[2].mxu0 }
 0x2d1   :  { %v346_v0 = vadd.f32 %v382_v62, %v345_v63  ;;  %v493_v1 = vpop.f32.mrb[3].mxu0 }
 0x2d3   :  { %349 = vmax.xlane.f32.xlu0 %v346_v0 }
 0x360   :  { %v350_v2 = vpop.xlane.xlu0 %349 }
 0x361   :  { %v351_v3 = vsub.f32 %v346_v0, %v350_v2 }
 0x363   :  { %v352_v4 = vmul.f32 1.442695, %v351_v3 }
 0x365   :  { %552 = vpow2.f32 %v352_v4 }
 0x36f   :  { %v553_v5 = vpop.eup %552 }
 0x370   :  { %354 = vadd.xlane.f32.xlu0 %v553_v5 }
 0x3fd   :  { %v355_v6 = vpop.xlane.xlu0 %354 }
 0x3fe   :  { %554 = vrcp.f32 %v355_v6 }
 0x408   :  { %v555_v7 = vpop.eup %554 }
 0x409   :  { %v357_v8 = vmul.f32 %v555_v7, %v355_v6 }
 0x40b   :  { %v358_v9 = vsub.f32 2.0, %v357_v8 }
 0x40d   :  { %v359_v10 = vmul.f32 %v555_v7, %v358_v9 }
 0x40f   :  { %v360_v11 = vmul.f32 %v553_v5, %v359_v10 }
 0x411   :  { %361 = vst.msk [vmem:[#allocation10] sm:$0xff] %vm87_vm1, %v360_v11 }
 0x412   :  { %655 = shalt.err (!%p652_p8)
}
 0x413   :  { %s656_s9 = scalar_lea.hbm %s821_s7, 128 }
 0x414   :  { %p657_p9 = scmp.ne.s32.totalorder %s821_s7, %s656_s9  ;;  %p660_p10 = scmp.lt.u32.totalorder %s656_s9, %s821_s7 }
 0x416   :  { %p662_p11 = pnand %p660_p10, %p657_p9 }
 0x418   :  { %665 = shalt.err (!%p662_p11)
}
 0x419   :  { %371 = dma.vmem_to_hbm [thread:$0]  %s369_s29, 128, %s821_s7, [#allocation4]  }
 0x41a   :  { %672 = dma.done.wait [#allocation4], 128  }
 0x41b   :  { %673 = vsyncadd [#allocation4], 4294967168 }
 0x41c   :  { %375 = vsyncpa [#allocation3], 1 }
 0x41d   :  { %376 = vsyncpa [#allocation6], 1 }
 0x41e   :  { %377 = vsyncpa [#allocation9], 1 }
 0x41f   :  { %378 = vsyncpa [#allocation4], 1 }

</bundles_post_ra>
